<compile_context>
chip_gen: v7x
topology: tpu7x:2x2x1
jax: 0.10.0
libtpu: 0.0.40
codegen_flags: <defaults>
</compile_context>

<pallas_src>
import functools

import jax
import jax.numpy as jnp
from jax.experimental import pallas as pl
from jax.experimental.pallas import tpu as pltpu


# --------------------------------------------------------------------------- kernel ---

def _ce_cvar_kernel(theta_ref, logits_ref, tgt_ref, acc_ref, relu_scratch,
                    *, n_valid, tile_n, tiles_per_core):
    """One (tile_n, C) logits tile: numerically stable per-sample cross-entropy fused
    with the CVaR partial reduction sum_i relu(loss_i - theta), accumulated in a
    vector-shaped VMEM scratch.  Rows past the true batch size are masked out."""
    c = pl.program_id(0)          # core-split axis ("parallel")
    i = pl.program_id(1)          # sample-tile axis ("arbitrary", carries the accumulator)

    @pl.when(i == 0)
    def _():
        relu_scratch[...] = jnp.zeros_like(relu_scratch)

    x = logits_ref[...]                                          # (tile_n, C), native dtype
    tgt = tgt_ref[...]                                           # (tile_n, 1) int32

    # Row statistics on the raw (unshifted) tile: max for the stable LSE, and the target
    # logit picked via a single select + lane-reduce (no separate shifted copy kept live).
    row_max = jnp.max(x, axis=-1, keepdims=True)                 # (tile_n, 1)
    cols = jax.lax.broadcasted_iota(jnp.int32, x.shape, 1)
    picked = jnp.sum(jnp.where(cols == tgt, x, 0.0),
                     axis=-1, keepdims=True)                     # (tile_n, 1)

    # Single f32 full-tile pass: exp(x - max) -> lane sum.
    sumexp = jnp.sum(jnp.exp((x - row_max).astype(jnp.float32)),
                     axis=-1, keepdims=True)                     # (tile_n, 1)

    # Per-sample CE: log(sum exp(x - max)) + max - x[target]
    loss = (jnp.log(sumexp)
            + row_max.astype(jnp.float32)
            - picked.astype(jnp.float32))                        # (tile_n, 1)

    # Mask rows beyond the true batch size (partial last block / duplicated clamped
    # blocks).  jnp.where is a select, so NaN/Inf from garbage rows never propagates.
    theta = theta_ref[0]
    rows = jax.lax.broadcasted_iota(jnp.int32, (tile_n, 1), 0)
    global_row = (c * tiles_per_core + i) * tile_n + rows
    contrib = jnp.where(global_row < n_valid,
                        jnp.maximum(loss - theta, 0.0),
                        0.0)

    # Vector-shaped accumulation: plain VPU adds, no per-iteration cross-sublane reduce.
    relu_scratch[...] = relu_scratch[...] + contrib

    @pl.when(i == pl.num_programs(1) - 1)
    def _():
        partial = jnp.sum(relu_scratch[...], axis=0, keepdims=True)    # (1, 1)
        acc_ref[...] = jnp.broadcast_to(partial, acc_ref.shape)        # (8, 128) slab


# ------------------------------------------------------------------------- helpers ---

def _vmem_capacity_bytes():
    """Physical VMEM of this chip generation; conservative v7x fallback (64 MiB)."""
    try:
        info = pltpu.get_tpu_info()
        cap = getattr(info, "vmem_capacity_bytes", None)
        if cap:
            return int(cap)
    except Exception:
        pass
    return 64 * 1024 * 1024


def _default_core_splits():
    """2 TensorCores per chip only on v7x; v5e/v6e are single-TC."""
    try:
        kind = jax.devices()[0].device_kind.lower()
        if "v7" in kind:
            return 2
    except Exception:
        pass
    return 1


def _choose_tile_n(n_rows, n_cols, num_core_splits, itemsize, byte_budget):
    """Largest row tile (multiple of 8, never taller than the array) whose VMEM
    footprint -- 2x double-buffered input block plus ~4 word-wide full-tile temporaries
    (f32 shifted/exp, i32 iota/select) -- fits the per-kernel byte budget."""
    per_row = 2 * n_cols * itemsize + 4 * n_cols * 4
    vmem_cap_rows = max(8, (byte_budget // per_row) // 8 * 8)
    if n_rows < 8:
        return n_rows                         # block == full (tiny) array dim
    row_cap = (n_rows // 8) * 8               # keep block rows <= array rows
    per_core = -(-n_rows // num_core_splits)  # ceil
    per_core = max(8, ((per_core + 7) // 8) * 8)
    return max(8, min(vmem_cap_rows, row_cap, per_core))


# ------------------------------------------------------------------------- wrapper ---

def soft_flooded_cvar_ce(logits, targets, theta, *, qlevel, flood_level,
                         num_core_splits=None):
    """Loss_SoftFloodedOCElike.forward for crit='CVaR' (qlevel>0), solve_internally=False,
    soft_variant=False (hard flood), loss='CrossEntropy' (reduction='none')."""
    if qlevel <= 0.0:
        raise ValueError("this kernel implements the qlevel > 0 branch")
    n, c_dim = logits.shape

    if num_core_splits is None:
        num_core_splits = _default_core_splits()
    num_core_splits = max(1, min(num_core_splits, max(1, n // 8)))

    itemsize = jnp.dtype(logits.dtype).itemsize
    vmem_limit = min(int(_vmem_capacity_bytes() * 0.75), 100 * 1024 * 1024)
    tile_budget = max(4 * 1024 * 1024, vmem_limit - 2 * 1024 * 1024)

    tile_n = _choose_tile_n(n, c_dim, num_core_splits, itemsize, tile_budget)
    n_blocks = pl.cdiv(n, tile_n)
    tiles_per_core = pl.cdiv(n_blocks, num_core_splits)
    last_block = n_blocks - 1

    # Block index clamped to the last in-range block: no DMA ever starts past the end of
    # the array; duplicated/ragged rows are masked in-kernel by global_row < n.
    def row_map(c, i):
        return (jnp.minimum(c * tiles_per_core + i, last_block), 0)

    targets = targets.reshape(n).astype(jnp.int32)
    tgt2d = targets.reshape(n, 1)
    theta_arr = jnp.asarray(theta, dtype=jnp.float32).reshape(1)

    kernel = functools.partial(_ce_cvar_kernel, n_valid=n, tile_n=tile_n,
                               tiles_per_core=tiles_per_core)

    partials = pl.pallas_call(
        kernel,
        out_shape=jax.ShapeDtypeStruct((num_core_splits, 8, 128), jnp.float32),
        grid_spec=pltpu.PrefetchScalarGridSpec(
            num_scalar_prefetch=0,
            grid=(num_core_splits, tiles_per_core),
            in_specs=[
                pl.BlockSpec(memory_space=pltpu.MemorySpace.SMEM),       # theta (1,)
                pl.BlockSpec((tile_n, c_dim), row_map),                  # logits tile
                pl.BlockSpec((tile_n, 1), row_map),                      # targets tile
            ],
            out_specs=pl.BlockSpec((None, 8, 128), lambda c, i: (c, 0, 0)),
            scratch_shapes=[pltpu.VMEM((tile_n, 1), jnp.float32)],
        ),
        compiler_params=pltpu.CompilerParams(
            dimension_semantics=("parallel", "arbitrary"),
            vmem_limit_bytes=vmem_limit,
        ),
        cost_estimate=pl.CostEstimate(
            flops=5 * n * c_dim,
            transcendentals=n * c_dim,
            bytes_accessed=n * c_dim * itemsize + n * 4
                           + num_core_splits * 8 * 128 * 4,
        ),
    )(theta_arr, logits, tgt2d)

    # Cheap scalar epilogue in plain JAX.
    theta_f = jnp.asarray(theta, jnp.float32)
    relu_sum = jnp.sum(partials[:, 0, 0])                   # sum of per-core partials
    mean_relu = relu_sum / jnp.float32(n)
    x = theta_f + mean_relu / jnp.float32(1.0 - qlevel)
    return jnp.abs(x - jnp.float32(flood_level)) + jnp.float32(flood_level)


# ------------------------------------------------------------------------ reference ---

def _reference(logits, targets, theta, qlevel, flood_level):
    logp = jax.nn.log_softmax(logits.astype(jnp.float32), axis=-1)
    ce = -logp[jnp.arange(logits.shape[0]), targets]
    x = theta + jnp.maximum(ce - theta, 0.0).mean() / (1.0 - qlevel)
    return jnp.abs(x - flood_level) + flood_level


if __name__ == "__main__":
    qlevel = 0.3
    flood_level = 0.1

    key = jax.random.PRNGKey(0)
    k1, k2, k3, k4 = jax.random.split(key, 4)

    # case 1: aligned batch, theta at its init value (theta_init = 0.0)
    n1, c1 = 64, 128
    logits1 = jax.random.normal(k1, (n1, c1), dtype=jnp.float32)
    targets1 = jax.random.randint(k2, (n1,), 0, c1, dtype=jnp.int32)
    out1 = jax.block_until_ready(
        soft_flooded_cvar_ce(logits1, targets1, 0.0,
                             qlevel=qlevel, flood_level=flood_level))
    ref1 = _reference(logits1, targets1, 0.0, qlevel, flood_level)
    assert jnp.allclose(out1, ref1, rtol=1e-5, atol=1e-5), (out1, ref1)

    # case 2: ragged batch (exercises partial last block + in-kernel masking), theta != 0
    n2, c2 = 50, 96
    logits2 = jax.random.normal(k3, (n2, c2), dtype=jnp.float32)
    targets2 = jax.random.randint(k4, (n2,), 0, c2, dtype=jnp.int32)
    out2 = jax.block_until_ready(
        soft_flooded_cvar_ce(logits2, targets2, 0.25,
                             qlevel=qlevel, flood_level=flood_level))
    ref2 = _reference(logits2, targets2, 0.25, qlevel, flood_level)
    assert jnp.allclose(out2, ref2, rtol=1e-5, atol=1e-5), (out2, ref2)

    print("KERNEL_OK")
</pallas_src>

<mosaic_0001>
module attributes {stable_mosaic.version = 11 : i64} {
  func.func @_ce_cvar_kernel(%arg0: i32, %arg1: i32, %arg2: memref<1xf32, #tpu.memory_space<smem>>, %arg3: memref<64x128xf32, #tpu.memory_space<vmem>>, %arg4: memref<64x1xi32, #tpu.memory_space<vmem>>, %arg5: memref<1x8x128xf32, #tpu.memory_space<vmem>>, %arg6: memref<64x1xf32, #tpu.memory_space<vmem>>) attributes {dimension_semantics = [#tpu.dimension_semantics<parallel>, #tpu.dimension_semantics<arbitrary>], iteration_bounds = array<i64: 1, 1>, scalar_prefetch = 0 : i64, scratch_operands = 1 : i64, tpu.core_type = #tpu.core_type<tc>, window_params = [{transform_indices = @transform_0, window_bounds = array<i64: 1>}, {transform_indices = @transform_1, window_bounds = array<i64: 64, 128>}, {transform_indices = @transform_2, window_bounds = array<i64: 64, 1>}, {transform_indices = @transform_3, window_bounds = array<i64: 1, 8, 128>}]} {
    %c0_i32 = arith.constant 0 : i32
    %0 = arith.cmpi eq, %arg1, %c0_i32 : i32
    %1 = arith.extui %0 : i1 to i32
    %c0_i32_0 = arith.constant 0 : i32
    %2 = arith.cmpi ne, %1, %c0_i32_0 : i32
    scf.if %2 {
      %cst_17 = arith.constant 0.000000e+00 : f32
      %43 = vector.broadcast %cst_17 : f32 to vector<64x1xf32>
      %c0_18 = arith.constant 0 : index
      %c0_19 = arith.constant 0 : index
      %44 = vector.load %arg6[%c0_18, %c0_19] : memref<64x1xf32, #tpu.memory_space<vmem>>, vector<64x1xf32>
      tpu.vector_store %arg6[%c0_18, %c0_19], %43 {strides = array<i32>} : memref<64x1xf32, #tpu.memory_space<vmem>>, vector<64x1xf32>,
    } else {
    }
    %c0 = arith.constant 0 : index
    %c0_1 = arith.constant 0 : index
    %3 = vector.load %arg3[%c0, %c0_1] : memref<64x128xf32, #tpu.memory_space<vmem>>, vector<64x128xf32>
    %c0_2 = arith.constant 0 : index
    %c0_3 = arith.constant 0 : index
    %4 = vector.load %arg4[%c0_2, %c0_3] : memref<64x1xi32, #tpu.memory_space<vmem>>, vector<64x1xi32>
    %cst = arith.constant dense<0xFF800000> : vector<64xf32>
    %5 = vector.multi_reduction <maximumf>, %3, %cst [1] : vector<64x128xf32> to vector<64xf32>
    %6 = vector.shape_cast %5 : vector<64xf32> to vector<64x1xf32>
    %7 = tpu.iota {dimensions = array<i32: 1>} : vector<64x128xi32>
    %8 = vector.broadcast %4 : vector<64x1xi32> to vector<64x128xi32>
    %9 = arith.cmpi eq, %7, %8 : vector<64x128xi32>
    %cst_4 = arith.constant 0.000000e+00 : f32
    %10 = vector.broadcast %cst_4 : f32 to vector<64x128xf32>
    %11 = arith.select %9, %3, %10 : vector<64x128xi1>, vector<64x128xf32>
    %cst_5 = arith.constant dense<0.000000e+00> : vector<64xf32>
    %12 = vector.multi_reduction <add>, %11, %cst_5 [1] : vector<64x128xf32> to vector<64xf32>
    %13 = vector.shape_cast %12 : vector<64xf32> to vector<64x1xf32>
    %14 = vector.broadcast %6 : vector<64x1xf32> to vector<64x128xf32>
    %15 = arith.subf %3, %14 : vector<64x128xf32>
    %16 = math.exp %15 : vector<64x128xf32>
    %cst_6 = arith.constant dense<0.000000e+00> : vector<64xf32>
    %17 = vector.multi_reduction <add>, %16, %cst_6 [1] : vector<64x128xf32> to vector<64xf32>
    %18 = vector.shape_cast %17 : vector<64xf32> to vector<64x1xf32>
    %19 = math.log %18 : vector<64x1xf32>
    %20 = arith.addf %19, %6 : vector<64x1xf32>
    %21 = arith.subf %20, %13 : vector<64x1xf32>
    %c0_7 = arith.constant 0 : index
    %22 = memref.load %arg2[%c0_7] : memref<1xf32, #tpu.memory_space<smem>>
    %23 = tpu.iota {dimensions = array<i32: 0>} : vector<64x1xi32>
    %c1_i32 = arith.constant 1 : i32
    %24 = arith.muli %arg0, %c1_i32 : i32
    %25 = arith.addi %24, %arg1 : i32
    %c64_i32 = arith.constant 64 : i32
    %26 = arith.muli %25, %c64_i32 : i32
    %27 = vector.broadcast %26 : i32 to vector<64x1xi32>
    %28 = arith.addi %27, %23 : vector<64x1xi32>
    %c64_i32_8 = arith.constant 64 : i32
    %29 = vector.broadcast %c64_i32_8 : i32 to vector<64x1xi32>
    %30 = arith.cmpi slt, %28, %29 : vector<64x1xi32>
    %31 = vector.broadcast %22 : f32 to vector<64x1xf32>
    %32 = arith.subf %21, %31 : vector<64x1xf32>
    %cst_9 = arith.constant 0.000000e+00 : f32
    %33 = vector.broadcast %cst_9 : f32 to vector<64x1xf32>
    %34 = arith.maximumf %32, %33 : vector<64x1xf32>
    %cst_10 = arith.constant 0.000000e+00 : f32
    %35 = vector.broadcast %cst_10 : f32 to vector<64x1xf32>
    %36 = arith.select %30, %34, %35 : vector<64x1xi1>, vector<64x1xf32>
    %c0_11 = arith.constant 0 : index
    %c0_12 = arith.constant 0 : index
    %37 = vector.load %arg6[%c0_11, %c0_12] : memref<64x1xf32, #tpu.memory_space<vmem>>, vector<64x1xf32>
    %38 = arith.addf %37, %36 : vector<64x1xf32>
    %c0_13 = arith.constant 0 : index
    %c0_14 = arith.constant 0 : index
    %39 = vector.load %arg6[%c0_13, %c0_14] : memref<64x1xf32, #tpu.memory_space<vmem>>, vector<64x1xf32>
    tpu.vector_store %arg6[%c0_13, %c0_14], %38 {strides = array<i32>} : memref<64x1xf32, #tpu.memory_space<vmem>>, vector<64x1xf32>,
    %c0_i32_15 = arith.constant 0 : i32
    %40 = arith.cmpi eq, %arg1, %c0_i32_15 : i32
    %41 = arith.extui %40 : i1 to i32
    %c0_i32_16 = arith.constant 0 : i32
    %42 = arith.cmpi ne, %41, %c0_i32_16 : i32
    scf.if %42 {
      %c0_17 = arith.constant 0 : index
      %c0_18 = arith.constant 0 : index
      %43 = vector.load %arg6[%c0_17, %c0_18] : memref<64x1xf32, #tpu.memory_space<vmem>>, vector<64x1xf32>
      %cst_19 = arith.constant dense<0.000000e+00> : vector<1xf32>
      %44 = vector.multi_reduction <add>, %43, %cst_19 [0] : vector<64x1xf32> to vector<1xf32>
      %45 = vector.shape_cast %44 : vector<1xf32> to vector<1x1xf32>
      %46 = vector.shape_cast %45 : vector<1x1xf32> to vector<1x1xf32>
      %47 = vector.broadcast %46 : vector<1x1xf32> to vector<8x128xf32>
      %c0_20 = arith.constant 0 : index
      %c0_21 = arith.constant 0 : index
      %c0_22 = arith.constant 0 : index
      %48 = vector.load %arg5[%c0_20, %c0_21, %c0_22] : memref<1x8x128xf32, #tpu.memory_space<vmem>>, vector<1x8x128xf32>
      %49 = vector.shape_cast %48 : vector<1x8x128xf32> to vector<8x128xf32>
      %50 = vector.shape_cast %47 : vector<8x128xf32> to vector<1x8x128xf32>
      tpu.vector_store %arg5[%c0_20, %c0_21, %c0_22], %50 {strides = array<i32>} : memref<1x8x128xf32, #tpu.memory_space<vmem>>, vector<1x8x128xf32>,
    } else {
    }
    return
  }
  func.func @transform_0(%arg0: i32, %arg1: i32) -> i32 {
    %c0_i32 = arith.constant 0 : i32
    %c0_i32_0 = arith.constant 0 : i32
    return %c0_i32 : i32
  }
  func.func @transform_1(%arg0: i32, %arg1: i32) -> (i32, i32) {
    %c1_i32 = arith.constant 1 : i32
    %0 = arith.muli %arg0, %c1_i32 : i32
    %1 = arith.addi %0, %arg1 : i32
    %c0_i32 = arith.constant 0 : i32
    %2 = arith.minsi %1, %c0_i32 : i32
    %c0_i32_0 = arith.constant 0 : i32
    %c0_i32_1 = arith.constant 0 : i32
    return %2, %c0_i32_0 : i32, i32
  }
  func.func @transform_2(%arg0: i32, %arg1: i32) -> (i32, i32) {
    %c1_i32 = arith.constant 1 : i32
    %0 = arith.muli %arg0, %c1_i32 : i32
    %1 = arith.addi %0, %arg1 : i32
    %c0_i32 = arith.constant 0 : i32
    %2 = arith.minsi %1, %c0_i32 : i32
    %c0_i32_0 = arith.constant 0 : i32
    %c0_i32_1 = arith.constant 0 : i32
    return %2, %c0_i32_0 : i32, i32
  }
  func.func @transform_3(%arg0: i32, %arg1: i32) -> (i32, i32, i32) {
    %c0_i32 = arith.constant 0 : i32
    %c0_i32_0 = arith.constant 0 : i32
    %c0_i32_1 = arith.constant 0 : i32
    return %arg0, %c0_i32, %c0_i32_0 : i32, i32, i32
  }
}

</mosaic_0001>

<bundles_post_ra>
// kernel: tpu_custom_call.1
= control target key start
LH: loop header
LB: loop body
LE: loop exit
PB: predicated region body
PF: predicated region fallthrough
CT: control target
= control target key end

     0   :  { %v459_v4 = vmov 0   ;;  %s641_s0 = inlined_call_operand.<no memory space> [shape: f32[1], index: 0, kind: input, shape index: {}]   ;;  %s642_s1 = inlined_call_operand.vmem [shape: f32[64,128], index: 1, kind: input, shape index: {}]   ;;  %s643_s2 = inlined_call_operand.vmem [shape: s32[64,1], index: 2, kind: input, shape index: {}]   ;;  %s644_s3 = inlined_call_operand.hbm [shape: f32[1,8,128], index: 3, kind: output, shape index: {}]  }
   0x1   :  { %v485_v0 = vld [vmem:[%s642_s1 + $0x10] sm:$0xff]  ;;  %v490_v1 = vld [vmem:[%s642_s1] sm:$0xff]  ;;  %v497_v2 = vld [vmem:[%s642_s1 + $0x18] sm:$0xff]  ;;  %402 = vset.pattern.permute.xlu1 %v459_v4  ;;  %401 = vset.pattern.permute.xlu0 %v459_v4 }
   0x2   :  { %113 = vmax.xlane.f32.xlu1 %v485_v0  ;;  %109 = vmax.xlane.f32.xlu0 %v490_v1  ;;  %v502_v3 = vld [vmem:[%s642_s1 + $0x8] sm:$0xff] }
   0x6   :  { %115 = vmax.xlane.f32.xlu1 %v497_v2  ;;  %111 = vmax.xlane.f32.xlu0 %v502_v3 }
   0x7   :  { %9 = vsyncpa [#allocation5], 0  ;;  %v509_v5 = vld [vmem:[%s642_s1 + $0x28] sm:$0xff]  ;;  %v514_v6 = vld [vmem:[%s642_s1 + $0x20] sm:$0xff]  ;;  %v125_v46 = vlaneseq  ;;  %vm84_vm8 = vcmask 7168   ;;  %v460_v4 = vmov 0.0  }
   0x8   :  { %v521_v7 = vld [vmem:[%s642_s1 + $0x38] sm:$0xff]  ;;  %v526_v8 = vld [vmem:[%s642_s1 + $0x30] sm:$0xff]  ;;  %v102_v9 = vld [vmem:[%s643_s2 + $0x8] sm:$0xff]  ;;  %86 = vst.msk [vmem:[#allocation2 + $0x8] sm:$0xff] %vm84_vm8, %v460_v4 }
   0x9   :  { %v103_v10 = vld [vmem:[%s643_s2 + $0x10] sm:$0xff]  ;;  %v101_v11 = vld [vmem:[%s643_s2] sm:$0xff]  ;;  %v104_v12 = vld [vmem:[%s643_s2 + $0x18] sm:$0xff]  ;;  %v126_v50 = vand.u32 127, %v125_v46  ;;  %85 = vst.msk [vmem:[#allocation2] sm:$0xff] %vm84_vm8, %v460_v4 }
   0xa   :  { %119 = vmax.xlane.f32.xlu1 %v509_v5  ;;  %117 = vmax.xlane.f32.xlu0 %v514_v6  ;;  %v105_v13 = vld [vmem:[%s643_s2 + $0x20] sm:$0xff]  ;;  %v106_v14 = vld [vmem:[%s643_s2 + $0x28] sm:$0xff]  ;;  %v107_v15 = vld [vmem:[%s643_s2 + $0x30] sm:$0xff]  ;;  %87 = vst.msk [vmem:[#allocation2 + $0x10] sm:$0xff] %vm84_vm8, %v460_v4 }
   0xb   :  { %v108_v16 = vld [vmem:[%s643_s2 + $0x38] sm:$0xff]  ;;  %88 = vst.msk [vmem:[#allocation2 + $0x18] sm:$0xff] %vm84_vm8, %v460_v4  ;;  %89 = vst.msk [vmem:[#allocation2 + $0x20] sm:$0xff] %vm84_vm8, %v460_v4 }
   0xc   :  { %90 = vst.msk [vmem:[#allocation2 + $0x28] sm:$0xff] %vm84_vm8, %v460_v4  ;;  %91 = vst.msk [vmem:[#allocation2 + $0x30] sm:$0xff] %vm84_vm8, %v460_v4 }
   0xd   :  { %92 = vst.msk [vmem:[#allocation2 + $0x38] sm:$0xff] %vm84_vm8, %v460_v4 }
   0xe   :  { %123 = vmax.xlane.f32.xlu1 %v521_v7  ;;  %121 = vmax.xlane.f32.xlu0 %v526_v8 }
  0x12   :  { %v312_v46 = vld [vmem:[#allocation2 + $0x18] sm:$0xff] }
  0x1f   :  { %131 = vperm.xlu1 %402, %v102_v9  }
  0x23   :  { %134 = vperm.xlu1 %402, %v103_v10  }
  0x24   :  { %128 = vperm.xlu0 %401, %v101_v11  }
  0x27   :  { %137 = vperm.xlu1 %402, %v104_v12  }
  0x2b   :  { %140 = vperm.xlu1 %402, %v105_v13  }
  0x2f   :  { %143 = vperm.xlu1 %402, %v106_v14  }
  0x33   :  { %146 = vperm.xlu1 %402, %v107_v15  }
  0x37   :  { %149 = vperm.xlu1 %402, %v108_v16  }
  0x8f   :  { %v554_v17 = vpop.xlane.xlu1 %113  ;;  %v556_v18 = vpop.xlane.xlu0 %109 }
  0x90   :  { %v183_v19 = vsub.f32 %v490_v1, %v556_v18  ;;  %v185_v25 = vsub.f32 %v485_v0, %v554_v17 }
  0x92   :  { %v191_v20 = vmul.f32 1.442695, %v183_v19  ;;  %v195_v32 = vmul.f32 1.442695, %v185_v25 }
  0x93   :  { %v560_v21 = vpop.xlane.xlu1 %115  ;;  %v562_v22 = vpop.xlane.xlu0 %111 }
  0x94   :  { %v186_v23 = vsub.f32 %v497_v2, %v560_v21  ;;  %v184_v24 = vsub.f32 %v502_v3, %v562_v22  ;;  %403 = vpow2.f32 %v191_v20 }
  0x96   :  { %v197_v26 = vmul.f32 1.442695, %v186_v23  ;;  %v193_v27 = vmul.f32 1.442695, %v184_v24 }
  0x97   :  { %v570_v28 = vpop.xlane.xlu1 %119  ;;  %v572_v29 = vpop.xlane.xlu0 %117 }
  0x98   :  { %405 = vpow2.f32 %v197_v26  ;;  %v188_v30 = vsub.f32 %v509_v5, %v570_v28  ;;  %v187_v31 = vsub.f32 %v514_v6, %v572_v29 }
  0x99   :  { %407 = vpow2.f32 %v193_v27 }
  0x9a   :  { %v201_v33 = vmul.f32 1.442695, %v188_v30  ;;  %v199_v35 = vmul.f32 1.442695, %v187_v31  ;;  %v284_v31 = vstv %s641_s0  ;;  %s461_s0 = smov [#allocation4]  }
  0x9b   :  { %v578_v34 = vpop.xlane.xlu1 %123  ;;  %v580_v36 = vpop.xlane.xlu0 %121  ;;  %s378_s17 = sshll.u32 %s461_s0, 4  ;;  %s379_s17 = int_to_ptr.vmem [resolvable:$true] %s378_s17 }
  0x9c   :  { %409 = vpow2.f32 %v201_v33  ;;  %v190_v37 = vsub.f32 %v521_v7, %v578_v34  ;;  %v189_v38 = vsub.f32 %v526_v8, %v580_v36  ;;  %s435_s18 = scalar_lea.vmem %s379_s17, 128  ;;  %p440_p1 = scmp.lt.s32.totalorder %s379_s17, %s379_s17 }
  0x9d   :  { %411 = vpow2.f32 %v195_v32  ;;  %p436_p0 = scmp.ne.s32.totalorder %s379_s17, %s435_s18  ;;  %p441_p2 = scmp.lt.s32.totalorder %s435_s18, %s435_s18 }
  0x9e   :  { %v205_v39 = vmul.f32 1.442695, %v190_v37  ;;  %v404_v40 = vpop.eup %403  ;;  %413 = vpow2.f32 %v199_v35  ;;  %v203_v42 = vmul.f32 1.442695, %v189_v38 }
  0x9f   :  { %v132_v41 = vpop.permute.xlu1 %131  ;;  %207 = vadd.xlane.f32.xlu1 %v404_v40  ;;  %p442_p3 = por %p441_p2, %p440_p1 }
  0xa0   :  { %415 = vpow2.f32 %v205_v39  ;;  %vm152_vm0 = vcmp.eq.s32.totalorder %v126_v50, %v132_v41 }
  0xa1   :  { %417 = vpow2.f32 %v203_v42  ;;  %v160_v57 = vsel %vm152_vm0, %v502_v3, 0.0  ;;  %p443_p4 = pnand %p442_p3, %p436_p0 }
  0xa2   :  { %v406_v43 = vpop.eup %405 }
  0xa3   :  { %v408_v44 = vpop.eup %407  ;;  %v135_v45 = vpop.permute.xlu1 %134  ;;  %213 = vadd.xlane.f32.xlu1 %v406_v43 }
  0xa4   :  { %209 = vadd.xlane.f32.xlu0 %v408_v44  ;;  %v129_v54 = vpop.permute.xlu0 %128  ;;  %vm153_vm3 = vcmp.eq.s32.totalorder %v126_v50, %v135_v45  ;;  %v310_v45 = vld [vmem:[#allocation2 + $0x8] sm:$0xff] }
  0xa5   :  { %vm151_vm1 = vcmp.eq.s32.totalorder %v126_v50, %v129_v54  ;;  %v161_v63 = vsel %vm153_vm3, %v485_v0, 0.0 }
  0xa6   :  { %v410_v47 = vpop.eup %409  ;;  %v159_v58 = vsel %vm151_vm1, %v490_v1, 0.0 }
  0xa7   :  { %v412_v48 = vpop.eup %411  ;;  %v138_v49 = vpop.permute.xlu1 %137  ;;  %217 = vadd.xlane.f32.xlu1 %v410_v47  ;;  %v309_v47 = vld [vmem:[#allocation2] sm:$0xff] }
  0xa8   :  { %211 = vadd.xlane.f32.xlu0 %v412_v48  ;;  %v414_v51 = vpop.eup %413  ;;  %vm154_vm2 = vcmp.eq.s32.totalorder %v126_v50, %v138_v49 }
  0xa9   :  { %v162_v60 = vsel %vm154_vm2, %v497_v2, 0.0 }
  0xaa   :  { %v416_v52 = vpop.eup %415 }
  0xab   :  { %v141_v53 = vpop.permute.xlu1 %140  ;;  %221 = vadd.xlane.f32.xlu1 %v416_v52  ;;  %v418_v55 = vpop.eup %417 }
  0xac   :  { %215 = vadd.xlane.f32.xlu0 %v414_v51  ;;  %vm155_vm5 = vcmp.eq.s32.totalorder %v126_v50, %v141_v53 }
  0xad   :  { %v163_v1 = vsel %vm155_vm5, %v514_v6, 0.0 }
  0xaf   :  { %v144_v56 = vpop.permute.xlu1 %143  ;;  %169 = vadd.xlane.f32.xlu1 %v160_v57 }
  0xb0   :  { %219 = vadd.xlane.f32.xlu0 %v418_v55  ;;  %vm156_vm4 = vcmp.eq.s32.totalorder %v126_v50, %v144_v56 }
  0xb1   :  { %v164_v62 = vsel %vm156_vm4, %v509_v5, 0.0 }
  0xb3   :  { %v147_v59 = vpop.permute.xlu1 %146  ;;  %173 = vadd.xlane.f32.xlu1 %v162_v60 }
  0xb4   :  { %167 = vadd.xlane.f32.xlu0 %v159_v58  ;;  %vm157_vm7 = vcmp.eq.s32.totalorder %v126_v50, %v147_v59 }
  0xb5   :  { %v165_v2 = vsel %vm157_vm7, %v526_v8, 0.0 }
  0xb7   :  { %v150_v61 = vpop.permute.xlu1 %149  ;;  %177 = vadd.xlane.f32.xlu1 %v164_v62 }
  0xb8   :  { %vm158_vm6 = vcmp.eq.s32.totalorder %v126_v50, %v150_v61  ;;  %171 = vadd.xlane.f32.xlu0 %v161_v63 }
  0xb9   :  { %v166_v3 = vsel %vm158_vm6, %v521_v7, 0.0 }
  0xbb   :  { %181 = vadd.xlane.f32.xlu1 %v166_v3 }
  0xbc   :  { %175 = vadd.xlane.f32.xlu0 %v163_v1  ;;  %v314_v1 = vld [vmem:[#allocation2 + $0x28] sm:$0xff] }
  0xc0   :  { %179 = vadd.xlane.f32.xlu0 %v165_v2  ;;  %v311_v2 = vld [vmem:[#allocation2 + $0x10] sm:$0xff] }
 0x12c   :  { %v208_v0 = vpop.xlane.xlu1 %207 }
 0x12d   :  { %419 = vlog2.f32 %v208_v0 }
 0x130   :  { %v214_v5 = vpop.xlane.xlu1 %213 }
 0x131   :  { %v210_v6 = vpop.xlane.xlu0 %209  ;;  %421 = vlog2.f32 %v214_v5 }
 0x132   :  { %423 = vlog2.f32 %v210_v6 }
 0x134   :  { %v218_v7 = vpop.xlane.xlu1 %217 }
 0x135   :  { %v212_v8 = vpop.xlane.xlu0 %211  ;;  %425 = vlog2.f32 %v218_v7 }
 0x136   :  { %427 = vlog2.f32 %v212_v8 }
 0x137   :  { %v420_v9 = vpop.eup %419 }
 0x138   :  { %v222_v10 = vpop.xlane.xlu1 %221  ;;  %v224_v13 = vmul.f32 0.6931472, %v420_v9 }
 0x139   :  { %v216_v11 = vpop.xlane.xlu0 %215  ;;  %429 = vlog2.f32 %v222_v10  ;;  %v316_v10 = vld [vmem:[#allocation2 + $0x38] sm:$0xff] }
 0x13a   :  { %431 = vlog2.f32 %v216_v11  ;;  %v239_v26 = vadd.f32 %v224_v13, %v556_v18  ;;  %v313_v11 = vld [vmem:[#allocation2 + $0x20] sm:$0xff] }
 0x13b   :  { %v422_v12 = vpop.eup %421 }
 0x13c   :  { %v424_v14 = vpop.eup %423  ;;  %v230_v15 = vmul.f32 0.6931472, %v422_v12  ;;  %v170_v16 = vpop.xlane.xlu1 %169 }
 0x13d   :  { %v220_v19 = vpop.xlane.xlu0 %219  ;;  %v226_v20 = vmul.f32 0.6931472, %v424_v14 }
 0x13e   :  { %433 = vlog2.f32 %v220_v19  ;;  %v242_v23 = vadd.f32 %v230_v15, %v560_v21 }
 0x13f   :  { %v426_v24 = vpop.eup %425  ;;  %v240_v25 = vadd.f32 %v226_v20, %v562_v22 }
 0x140   :  { %v428_v27 = vpop.eup %427  ;;  %v234_v30 = vmul.f32 0.6931472, %v426_v24  ;;  %v174_v32 = vpop.xlane.xlu1 %173 }
 0x141   :  { %v168_v33 = vpop.xlane.xlu0 %167  ;;  %v228_v35 = vmul.f32 0.6931472, %v428_v27  ;;  %v248_v37 = vsub.f32 %v240_v25, %v170_v16  ;;  %v250_v38 = vsub.f32 %v242_v23, %v174_v32  ;;  %v315_v23 = vld [vmem:[#allocation2 + $0x30] sm:$0xff] }
 0x142   :  { %v247_v39 = vsub.f32 %v239_v26, %v168_v33  ;;  %v244_v40 = vadd.f32 %v234_v30, %v570_v28 }
 0x143   :  { %v430_v21 = vpop.eup %429  ;;  %v286_v41 = vsub.f32 %v248_v37, %v284_v31  ;;  %v288_v42 = vsub.f32 %v250_v38, %v284_v31  ;;  %v241_v18 = vadd.f32 %v228_v35, %v554_v17 }
 0x144   :  { %v285_v22 = vsub.f32 %v247_v39, %v284_v31  ;;  %v432_v43 = vpop.eup %431  ;;  %v238_v44 = vmul.f32 0.6931472, %v430_v21  ;;  %v178_v48 = vpop.xlane.xlu1 %177 }
 0x145   :  { %v172_v49 = vpop.xlane.xlu0 %171  ;;  %v232_v50 = vmul.f32 0.6931472, %v432_v43  ;;  %v294_v51 = vmax.f32 %v286_v41, 0.0  ;;  %v296_v52 = vmax.f32 %v288_v42, 0.0  ;;  %v252_v54 = vsub.f32 %v244_v40, %v178_v48 }
 0x146   :  { %v293_v53 = vmax.f32 %v285_v22, 0.0  ;;  %v249_v55 = vsub.f32 %v241_v18, %v172_v49  ;;  %v246_v28 = vadd.f32 %v238_v44, %v578_v34 }
 0x147   :  { %v318_v57 = vadd.f32 %v310_v45, %v294_v51  ;;  %v320_v58 = vadd.f32 %v312_v46, %v296_v52  ;;  %v243_v17 = vadd.f32 %v232_v50, %v572_v29  ;;  %v290_v61 = vsub.f32 %v252_v54, %v284_v31 }
 0x148   :  { %v434_v56 = vpop.eup %433  ;;  %v317_v59 = vadd.f32 %v309_v47, %v293_v53  ;;  %v287_v62 = vsub.f32 %v249_v55, %v284_v31  ;;  %v182_v63 = vpop.xlane.xlu1 %181 }
 0x149   :  { %v236_v60 = vmul.f32 0.6931472, %v434_v56  ;;  %v176_v3 = vpop.xlane.xlu0 %175  ;;  %327 = vst.msk [vmem:[#allocation2 + $0x8] sm:$0xff] %vm84_vm8, %v318_v57  ;;  %329 = vst.msk [vmem:[#allocation2 + $0x18] sm:$0xff] %vm84_vm8, %v320_v58  ;;  %v254_v34 = vsub.f32 %v246_v28, %v182_v63  ;;  %v298_v0 = vmax.f32 %v290_v61, 0.0 }
 0x14a   :  { %326 = vst.msk [vmem:[#allocation2] sm:$0xff] %vm84_vm8, %v317_v59  ;;  %v251_v4 = vsub.f32 %v243_v17, %v176_v3  ;;  %v295_v5 = vmax.f32 %v287_v62, 0.0 }
 0x14b   :  { %v245_v6 = vadd.f32 %v236_v60, %v580_v36  ;;  %v292_v29 = vsub.f32 %v254_v34, %v284_v31  ;;  %v322_v8 = vadd.f32 %v314_v1, %v298_v0 }
 0x14c   :  { %v289_v7 = vsub.f32 %v251_v4, %v284_v31  ;;  %v319_v9 = vadd.f32 %v311_v2, %v295_v5 }
 0x14d   :  { %v180_v12 = vpop.xlane.xlu0 %179  ;;  %v300_v13 = vmax.f32 %v292_v29, 0.0  ;;  %331 = vst.msk [vmem:[#allocation2 + $0x28] sm:$0xff] %vm84_vm8, %v322_v8 }
 0x14e   :  { %v297_v14 = vmax.f32 %v289_v7, 0.0  ;;  %v253_v15 = vsub.f32 %v245_v6, %v180_v12  ;;  %328 = vst.msk [vmem:[#allocation2 + $0x10] sm:$0xff] %vm84_vm8, %v319_v9 }
 0x14f   :  { %v324_v16 = vadd.f32 %v316_v10, %v300_v13 }
 0x150   :  { %v321_v19 = vadd.f32 %v313_v11, %v297_v14  ;;  %v291_v20 = vsub.f32 %v253_v15, %v284_v31  ;;  %v338_v36 = vld [vmem:[#allocation2 + $0x8] sm:$0xff]  ;;  %v340_v33 = vld [vmem:[#allocation2 + $0x18] sm:$0xff] }
 0x151   :  { %v337_v24 = vld [vmem:[#allocation2] sm:$0xff]  ;;  %333 = vst.msk [vmem:[#allocation2 + $0x38] sm:$0xff] %vm84_vm8, %v324_v16  ;;  %v346_v27 = vsel %vm84_vm8, %v338_v36, 0.0  ;;  %v350_v39 = vsel %vm84_vm8, %v340_v33, 0.0 }
 0x152   :  { %330 = vst.msk [vmem:[#allocation2 + $0x20] sm:$0xff] %vm84_vm8, %v321_v19  ;;  %v299_v25 = vmax.f32 %v291_v20, 0.0  ;;  %v345_v26 = vsel %vm84_vm8, %v337_v24, 0.0 }
 0x153   :  { %v347_v35 = vadd.f32 %v346_v27, %v345_v26 }
 0x154   :  { %v323_v30 = vadd.f32 %v315_v23, %v299_v25  ;;  %v342_v40 = vld [vmem:[#allocation2 + $0x28] sm:$0xff] }
 0x155   :  { %v339_v32 = vld [vmem:[#allocation2 + $0x10] sm:$0xff]  ;;  %v354_v18 = vsel %vm84_vm8, %v342_v40, 0.0 }
 0x156   :  { %332 = vst.msk [vmem:[#allocation2 + $0x30] sm:$0xff] %vm84_vm8, %v323_v30  ;;  %v348_v31 = vsel %vm84_vm8, %v339_v32, 0.0 }
 0x157   :  { %v349_v37 = vadd.f32 %v348_v31, %v347_v35 }
 0x158   :  { %v344_v43 = vld [vmem:[#allocation2 + $0x38] sm:$0xff] }
 0x159   :  { %v341_v38 = vld [vmem:[#allocation2 + $0x20] sm:$0xff]  ;;  %v351_v21 = vadd.f32 %v350_v39, %v349_v37  ;;  %v358_v47 = vsel %vm84_vm8, %v344_v43, 0.0 }
 0x15a   :  { %v352_v41 = vsel %vm84_vm8, %v341_v38, 0.0 }
 0x15b   :  { %v353_v42 = vadd.f32 %v352_v41, %v351_v21 }
 0x15d   :  { %v343_v22 = vld [vmem:[#allocation2 + $0x30] sm:$0xff]  ;;  %v355_v44 = vadd.f32 %v354_v18, %v353_v42 }
 0x15e   :  { %v356_v45 = vsel %vm84_vm8, %v343_v22, 0.0 }
 0x15f   :  { %v357_v46 = vadd.f32 %v356_v45, %v355_v44 }
 0x161   :  { %v359_v48 = vadd.f32 %v358_v47, %v357_v46 }
 0x163   :  { %v360_v49 = vrot.slane %v359_v48, 4 }
 0x165   :  { %v361_v50 = vadd.f32 %v360_v49, %v359_v48 }
 0x167   :  { %v362_v51 = vrot.slane %v361_v50, 2 }
 0x169   :  { %v363_v52 = vadd.f32 %v362_v51, %v361_v50 }
 0x16b   :  { %v364_v53 = vrot.slane %v363_v52, 1 }
 0x16d   :  { %v365_v54 = vadd.f32 %v364_v53, %v363_v52 }
 0x16f   :  { %368 = vperm.xlu0 %401, %v365_v54  }
 0x1ee   :  { %v369_v55 = vpop.permute.xlu0 %368 }
 0x1ef   :  { %371 = vst [vmem:[#allocation4] sm:$0xff] %v369_v55 }
 0x1f0   :  { %446 = shalt.err (!%p443_p4)
}
 0x1f1   :  { %s447_s21 = scalar_lea.hbm %s644_s3, 128 }
 0x1f2   :  { %p448_p5 = scmp.ne.s32.totalorder %s644_s3, %s447_s21  ;;  %p451_p6 = scmp.lt.u32.totalorder %s447_s21, %s644_s3 }
 0x1f4   :  { %p453_p7 = pnand %p451_p6, %p448_p5 }
 0x1f6   :  { %456 = shalt.err (!%p453_p7)
}
 0x1f7   :  { %381 = dma.vmem_to_hbm [thread:$0]  %s379_s17, 128, %s644_s3, [#allocation5]  }
 0x1f8   :  { %457 = dma.done.wait [#allocation5], 128  }
 0x1f9   :  { %458 = vsyncadd [#allocation5], 4294967168 }
 0x1fa   :  { %385 = vsyncpa [#allocation5], 1 }

</bundles_post_ra>
